<compile_context>
chip_gen: v7x
topology: tpu7x:2x2x1
jax: 0.10.0
libtpu: 0.0.40
codegen_flags: <defaults>
</compile_context>

<pallas_src>
import functools

import jax
import jax.numpy as jnp
from jax.experimental import pallas as pl
from jax.experimental.pallas import tpu as pltpu

LANE = 128          # vreg lane width (last dim)
SUBLANE_BF16 = 16   # bf16 sublane packing (second-to-last dim)


def _round_up(n, m):
    return (n + m - 1) // m * m


def _pick_tile(dim, cap):
    """Largest multiple-of-128 tile <= cap that divides `dim` (dim % 128 == 0)."""
    t = max(LANE, (min(dim, cap) // LANE) * LANE)
    while dim % t != 0:
        t -= LANE
    return t


def _pad2(a, shape, dtype):
    buf = jnp.zeros(shape, dtype)
    return buf.at[: a.shape[0], : a.shape[1]].set(a.astype(dtype))


# ----------------------------------------------------------------------------
# Kernels
# ----------------------------------------------------------------------------
def _mlp_fused_kernel(x_ref, w1_ref, b1_ref, w2_ref, b2_ref, w3_ref, b3_ref, o_ref):
    x = x_ref[...]                                                   # (tm, d_in) bf16
    # fc1 + ReLU  (bf16 operands, f32 accumulation on the MXU)
    h = jnp.dot(x, w1_ref[...], preferred_element_type=jnp.float32) + b1_ref[...]
    h = jnp.maximum(h, 0.0).astype(x.dtype)
    # fc2 + ReLU
    h = jnp.dot(h, w2_ref[...], preferred_element_type=jnp.float32) + b2_ref[...]
    h = jnp.maximum(h, 0.0).astype(x.dtype)
    # fc3 (no activation)
    out = jnp.dot(h, w3_ref[...], preferred_element_type=jnp.float32) + b3_ref[...]
    o_ref[...] = out.astype(o_ref.dtype)


def _linear_kernel(x_ref, w_ref, b_ref, o_ref, acc_ref, *, activation):
    """One (i, j, k)-tiled linear layer: out = act(x @ w + b)."""
    @pl.when(pl.program_id(2) == 0)
    def _():
        acc_ref[...] = jnp.zeros_like(acc_ref)

    acc_ref[...] += jnp.dot(x_ref[...], w_ref[...],
                            preferred_element_type=jnp.float32)

    @pl.when(pl.program_id(2) == pl.num_programs(2) - 1)
    def _():
        r = acc_ref[...] + b_ref[...]
        if activation:
            r = jnp.maximum(r, 0.0)
        o_ref[...] = r.astype(o_ref.dtype)


# ----------------------------------------------------------------------------
# Wrappers
# ----------------------------------------------------------------------------
def _linear_pallas(xp, wp, bp, *, activation, tm, out_dtype,
                   tn_cap=512, tk_cap=512):
    """Tiled x @ w + b (+ReLU) for the case where weights don't fit resident."""
    M, K = xp.shape
    _, N = wp.shape
    tn = _pick_tile(N, tn_cap)
    tk = _pick_tile(K, tk_cap)
    grid = (M // tm, N // tn, K // tk)

    o_size = jnp.dtype(out_dtype).itemsize
    needed = (2 * tm * tk * xp.dtype.itemsize          # x tiles (double-buffered)
              + 2 * tk * tn * wp.dtype.itemsize        # w tiles
              + 2 * tn * 4                             # bias tiles
              + 2 * tm * tn * o_size                   # out tiles
              + tm * tn * 4)                           # f32 accumulator scratch
    vmem_limit = int(min(max(2 * needed + (16 << 20), 32 << 20), 64 << 20))

    cost = pl.CostEstimate(
        flops=2 * M * N * K,
        transcendentals=0,
        bytes_accessed=(xp.size * xp.dtype.itemsize + wp.size * wp.dtype.itemsize
                        + bp.size * 4 + M * N * o_size),
    )

    return pl.pallas_call(
        functools.partial(_linear_kernel, activation=activation),
        out_shape=jax.ShapeDtypeStruct((M, N), out_dtype),
        grid_spec=pltpu.PrefetchScalarGridSpec(
            num_scalar_prefetch=0,
            grid=grid,
            in_specs=[
                pl.BlockSpec((tm, tk), lambda i, j, k: (i, k)),
                pl.BlockSpec((tk, tn), lambda i, j, k: (k, j)),
                pl.BlockSpec((1, tn), lambda i, j, k: (0, j)),
            ],
            out_specs=pl.BlockSpec((tm, tn), lambda i, j, k: (i, j)),
            scratch_shapes=[pltpu.VMEM((tm, tn), jnp.float32)],
        ),
        compiler_params=pltpu.CompilerParams(
            dimension_semantics=("parallel", "parallel", "arbitrary"),
            vmem_limit_bytes=vmem_limit,
        ),
        cost_estimate=cost,
    )(xp, wp, bp)


def prepare_mlp_params(w1, b1, w2, b2, w3, b3, *,
                       compute_dtype=jnp.bfloat16, feature_align=LANE):
    """One-time pad + cast of the weights (hoisted out of the per-call path).

    Weights are stored as (in, out) so the kernel computes x @ W == x @ W_torch.T.
    Feature dims are zero-padded to a multiple of `feature_align` (128 default;
    256 can be marginally better on v6e/v7x when dims are near a 256 multiple).
    """
    b1 = jnp.reshape(b1, (1, -1))
    b2 = jnp.reshape(b2, (1, -1))
    b3 = jnp.reshape(b3, (1, -1))

    input_dim, hidden_dim = w1.shape
    output_dim = w3.shape[1]
    d_in = _round_up(input_dim, feature_align)
    d_h = _round_up(hidden_dim, feature_align)
    d_out = _round_up(output_dim, feature_align)

    # TODO(synk): on v7x, optionally store w1/w2 as fp8 (e4m3) for ~2x MXU rate
    # and half the resident-weight VMEM (gate behind an accuracy check).
    return {
        "w1": _pad2(w1, (d_in, d_h), compute_dtype),
        "b1": _pad2(b1, (1, d_h), jnp.float32),      # biases stay f32
        "w2": _pad2(w2, (d_h, d_h), compute_dtype),
        "b2": _pad2(b2, (1, d_h), jnp.float32),
        "w3": _pad2(w3, (d_h, d_out), compute_dtype),
        "b3": _pad2(b3, (1, d_out), jnp.float32),
    }


def mlp_pallas(x, params, *, output_dim, tm=128, out_dtype=jnp.bfloat16,
               fused_vmem_budget_bytes=48 << 20, force_layerwise=False):
    """Fused fc1 -> ReLU -> fc2 -> ReLU -> fc3 on pre-padded/pre-cast params.

    x: (B, input_dim) f32.  Returns (B, output_dim) in `out_dtype` (bf16 default).
    """
    w1p, b1p = params["w1"], params["b1"]
    w2p, b2p = params["w2"], params["b2"]
    w3p, b3p = params["w3"], params["b3"]

    B, input_dim = x.shape
    d_in, d_h = w1p.shape
    d_out = w3p.shape[1]
    compute_dtype = w1p.dtype
    c_size = jnp.dtype(compute_dtype).itemsize
    o_size = jnp.dtype(out_dtype).itemsize

    # ---- batch tile: multiple of 16 (bf16 sublane packing) -----------------
    tm = max(SUBLANE_BF16, min(int(tm), _round_up(B, SUBLANE_BF16)))
    tm = _round_up(tm, SUBLANE_BF16)
    b_pad16 = _round_up(B, SUBLANE_BF16)
    # v7x megacore: make sure the "parallel" batch axis has >= 2 grid steps.
    if b_pad16 // tm < 2 and b_pad16 >= 2 * SUBLANE_BF16:
        tm = _round_up(pl.cdiv(b_pad16, 2), SUBLANE_BF16)
    B_pad = _round_up(B, tm)

    # Only the activation is padded/cast per call; weights were prepared once.
    xp = jnp.zeros((B_pad, d_in), compute_dtype).at[:B, :input_dim].set(
        x.astype(compute_dtype))

    # ---- resident-weight VMEM footprint of the fused kernel ----------------
    w_bytes = (w1p.size + w2p.size + w3p.size) * c_size            # single-buffered
    b_bytes = (b1p.size + b2p.size + b3p.size) * 4
    tile_bytes = 2 * tm * d_in * c_size + 2 * tm * d_out * o_size  # x/out, 2 bufs
    inter_bytes = 2 * tm * d_h * 4                                  # f32 intermediates
    needed = w_bytes + b_bytes + tile_bytes + inter_bytes

    if force_layerwise or needed > fused_vmem_budget_bytes:
        # Too large to keep all weights resident (e.g. v7x 64 MiB VMEM): run each
        # layer as a standard (i, j, k)-tiled matmul with an f32 accumulator.
        h = _linear_pallas(xp, w1p, b1p, activation=True, tm=tm,
                           out_dtype=compute_dtype)
        h = _linear_pallas(h, w2p, b2p, activation=True, tm=tm,
                           out_dtype=compute_dtype)
        outp = _linear_pallas(h, w3p, b3p, activation=False, tm=tm,
                              out_dtype=out_dtype)
        return outp[:B, :output_dim]

    vmem_limit = int(min(max(int(needed * 1.5) + (8 << 20), 32 << 20), 64 << 20))

    cost = pl.CostEstimate(
        flops=2 * B_pad * (d_in * d_h + d_h * d_h + d_h * d_out),
        transcendentals=0,
        bytes_accessed=(xp.size * c_size + w_bytes + b_bytes
                        + B_pad * d_out * o_size),
    )

    inv = pl.Buffered(1)   # grid-invariant inputs: single buffer, no VMEM waste

    out_padded = pl.pallas_call(
        _mlp_fused_kernel,
        out_shape=jax.ShapeDtypeStruct((B_pad, d_out), out_dtype),
        grid_spec=pltpu.PrefetchScalarGridSpec(
            num_scalar_prefetch=0,
            grid=(B_pad // tm,),
            in_specs=[
                # x tile: pipelined (default double-buffering) over the batch axis
                pl.BlockSpec((tm, d_in), lambda i: (i, 0)),
                # weights / biases: grid-invariant -> single-buffered
                pl.BlockSpec((d_in, d_h), lambda i: (0, 0), pipeline_mode=inv),
                pl.BlockSpec((1, d_h), lambda i: (0, 0), pipeline_mode=inv),
                pl.BlockSpec((d_h, d_h), lambda i: (0, 0), pipeline_mode=inv),
                pl.BlockSpec((1, d_h), lambda i: (0, 0), pipeline_mode=inv),
                pl.BlockSpec((d_h, d_out), lambda i: (0, 0), pipeline_mode=inv),
                pl.BlockSpec((1, d_out), lambda i: (0, 0), pipeline_mode=inv),
            ],
            out_specs=pl.BlockSpec((tm, d_out), lambda i: (i, 0)),  # lane-dense
        ),
        compiler_params=pltpu.CompilerParams(
            dimension_semantics=("parallel",),   # megacore split on v7x
            vmem_limit_bytes=vmem_limit,
        ),
        cost_estimate=cost,
    )(xp, w1p, b1p, w2p, b2p, w3p, b3p)

    return out_padded[:B, :output_dim]


def init_linear(key, in_dim, out_dim):
    """Deterministic init mimicking nn.Linear's uniform(-1/sqrt(in), 1/sqrt(in))."""
    kw, kb = jax.random.split(key)
    bound = 1.0 / jnp.sqrt(in_dim)
    # Stored as (in, out) so the kernel computes x @ W (== x @ W_torch.T).
    w = jax.random.uniform(kw, (in_dim, out_dim), jnp.float32, -bound, bound)
    b = jax.random.uniform(kb, (1, out_dim), jnp.float32, -bound, bound)
    return w, b


if __name__ == "__main__":
    input_dim, hidden_dim, output_dim = 16, 32, 8
    batch = 8

    key = jax.random.PRNGKey(0)
    kx, k1, k2, k3 = jax.random.split(key, 4)

    x = jax.random.normal(kx, (batch, input_dim), jnp.float32)
    w1, b1 = init_linear(k1, input_dim, hidden_dim)
    w2, b2 = init_linear(k2, hidden_dim, hidden_dim)
    w3, b3 = init_linear(k3, hidden_dim, output_dim)

    # One-time weight pad/cast, hoisted out of the per-call (jitted) path.
    params = prepare_mlp_params(w1, b1, w2, b2, w3, b3)

    mlp_fused = jax.jit(functools.partial(mlp_pallas, output_dim=output_dim))
    out = jax.block_until_ready(mlp_fused(x, params))
    assert out.shape == (batch, output_dim)

    # Also exercise the layerwise (K-tiled) fallback path used for large weights.
    mlp_layerwise = jax.jit(functools.partial(
        mlp_pallas, output_dim=output_dim, force_layerwise=True))
    out_lw = jax.block_until_ready(mlp_layerwise(x, params))
    assert out_lw.shape == (batch, output_dim)

    # Reference matching the kernel's precision (bf16 operands, f32 accumulation).
    bf = jnp.bfloat16
    h = jnp.maximum(jnp.dot(x.astype(bf), w1.astype(bf),
                            preferred_element_type=jnp.float32) + b1, 0.0)
    h = jnp.maximum(jnp.dot(h.astype(bf), w2.astype(bf),
                            preferred_element_type=jnp.float32) + b2, 0.0)
    ref_bf16 = jnp.dot(h.astype(bf), w3.astype(bf),
                       preferred_element_type=jnp.float32) + b3

    out_f32 = out.astype(jnp.float32)
    out_lw_f32 = out_lw.astype(jnp.float32)
    assert jnp.allclose(out_f32, ref_bf16, atol=2e-2, rtol=2e-2), \
        float(jnp.max(jnp.abs(out_f32 - ref_bf16)))
    assert jnp.allclose(out_lw_f32, ref_bf16, atol=2e-2, rtol=2e-2), \
        float(jnp.max(jnp.abs(out_lw_f32 - ref_bf16)))

    # Sanity check vs. the full-f32 PyTorch-equivalent math (loose: bf16 path).
    ref_f32 = jnp.maximum(x @ w1 + b1, 0.0)
    ref_f32 = jnp.maximum(ref_f32 @ w2 + b2, 0.0)
    ref_f32 = ref_f32 @ w3 + b3
    assert jnp.allclose(out_f32, ref_f32, atol=1e-1, rtol=1e-1)
    assert jnp.allclose(out_lw_f32, ref_f32, atol=1e-1, rtol=1e-1)

    print("KERNEL_OK")
</pallas_src>

<mosaic_0001>
module attributes {stable_mosaic.version = 11 : i64} {
  func.func @_mlp_fused_kernel(%arg0: i32, %arg1: memref<16x128xbf16, #tpu.memory_space<vmem>>, %arg2: memref<128x128xbf16, #tpu.memory_space<vmem>>, %arg3: memref<1x128xf32, #tpu.memory_space<vmem>>, %arg4: memref<128x128xbf16, #tpu.memory_space<vmem>>, %arg5: memref<1x128xf32, #tpu.memory_space<vmem>>, %arg6: memref<128x128xbf16, #tpu.memory_space<vmem>>, %arg7: memref<1x128xf32, #tpu.memory_space<vmem>>, %arg8: memref<16x128xbf16, #tpu.memory_space<vmem>>) attributes {dimension_semantics = [#tpu.dimension_semantics<parallel>], iteration_bounds = array<i64: 1>, scalar_prefetch = 0 : i64, scratch_operands = 0 : i64, tpu.core_type = #tpu.core_type<tc>, window_params = [{transform_indices = @transform_0, window_bounds = array<i64: 16, 128>}, {pipeline_mode = #tpu.pipeline_mode<synchronous>, transform_indices = @transform_1, window_bounds = array<i64: 128, 128>}, {pipeline_mode = #tpu.pipeline_mode<synchronous>, transform_indices = @transform_2, window_bounds = array<i64: 1, 128>}, {pipeline_mode = #tpu.pipeline_mode<synchronous>, transform_indices = @transform_3, window_bounds = array<i64: 128, 128>}, {pipeline_mode = #tpu.pipeline_mode<synchronous>, transform_indices = @transform_4, window_bounds = array<i64: 1, 128>}, {pipeline_mode = #tpu.pipeline_mode<synchronous>, transform_indices = @transform_5, window_bounds = array<i64: 128, 128>}, {pipeline_mode = #tpu.pipeline_mode<synchronous>, transform_indices = @transform_6, window_bounds = array<i64: 1, 128>}, {transform_indices = @transform_7, window_bounds = array<i64: 16, 128>}]} {
    %c0 = arith.constant 0 : index
    %c0_0 = arith.constant 0 : index
    %0 = vector.load %arg1[%c0, %c0_0] : memref<16x128xbf16, #tpu.memory_space<vmem>>, vector<16x128xbf16>
    %c0_1 = arith.constant 0 : index
    %c0_2 = arith.constant 0 : index
    %1 = vector.load %arg2[%c0_1, %c0_2] : memref<128x128xbf16, #tpu.memory_space<vmem>>, vector<128x128xbf16>
    %cst = arith.constant dense<0.000000e+00> : vector<16x128xf32>
    %2 = tpu.matmul %0, %1, %cst {dimension_numbers = #tpu.dot_dimension_numbers<[1], [0], [0], [1], [0, 0, 1, 1], [], []>} : vector<16x128xbf16>, vector<128x128xbf16>, vector<16x128xf32> -> vector<16x128xf32>
    %c0_3 = arith.constant 0 : index
    %c0_4 = arith.constant 0 : index
    %3 = vector.load %arg3[%c0_3, %c0_4] : memref<1x128xf32, #tpu.memory_space<vmem>>, vector<1x128xf32>
    %4 = vector.broadcast %3 : vector<1x128xf32> to vector<16x128xf32>
    %5 = arith.addf %2, %4 : vector<16x128xf32>
    %cst_5 = arith.constant 0.000000e+00 : f32
    %6 = vector.broadcast %cst_5 : f32 to vector<16x128xf32>
    %7 = arith.maximumf %5, %6 : vector<16x128xf32>
    %8 = arith.truncf %7 : vector<16x128xf32> to vector<16x128xbf16>
    %c0_6 = arith.constant 0 : index
    %c0_7 = arith.constant 0 : index
    %9 = vector.load %arg4[%c0_6, %c0_7] : memref<128x128xbf16, #tpu.memory_space<vmem>>, vector<128x128xbf16>
    %cst_8 = arith.constant dense<0.000000e+00> : vector<16x128xf32>
    %10 = tpu.matmul %8, %9, %cst_8 {dimension_numbers = #tpu.dot_dimension_numbers<[1], [0], [0], [1], [0, 0, 1, 1], [], []>} : vector<16x128xbf16>, vector<128x128xbf16>, vector<16x128xf32> -> vector<16x128xf32>
    %c0_9 = arith.constant 0 : index
    %c0_10 = arith.constant 0 : index
    %11 = vector.load %arg5[%c0_9, %c0_10] : memref<1x128xf32, #tpu.memory_space<vmem>>, vector<1x128xf32>
    %12 = vector.broadcast %11 : vector<1x128xf32> to vector<16x128xf32>
    %13 = arith.addf %10, %12 : vector<16x128xf32>
    %cst_11 = arith.constant 0.000000e+00 : f32
    %14 = vector.broadcast %cst_11 : f32 to vector<16x128xf32>
    %15 = arith.maximumf %13, %14 : vector<16x128xf32>
    %16 = arith.truncf %15 : vector<16x128xf32> to vector<16x128xbf16>
    %c0_12 = arith.constant 0 : index
    %c0_13 = arith.constant 0 : index
    %17 = vector.load %arg6[%c0_12, %c0_13] : memref<128x128xbf16, #tpu.memory_space<vmem>>, vector<128x128xbf16>
    %cst_14 = arith.constant dense<0.000000e+00> : vector<16x128xf32>
    %18 = tpu.matmul %16, %17, %cst_14 {dimension_numbers = #tpu.dot_dimension_numbers<[1], [0], [0], [1], [0, 0, 1, 1], [], []>} : vector<16x128xbf16>, vector<128x128xbf16>, vector<16x128xf32> -> vector<16x128xf32>
    %c0_15 = arith.constant 0 : index
    %c0_16 = arith.constant 0 : index
    %19 = vector.load %arg7[%c0_15, %c0_16] : memref<1x128xf32, #tpu.memory_space<vmem>>, vector<1x128xf32>
    %20 = vector.broadcast %19 : vector<1x128xf32> to vector<16x128xf32>
    %21 = arith.addf %18, %20 : vector<16x128xf32>
    %22 = arith.truncf %21 : vector<16x128xf32> to vector<16x128xbf16>
    %c0_17 = arith.constant 0 : index
    %c0_18 = arith.constant 0 : index
    %23 = vector.load %arg8[%c0_17, %c0_18] : memref<16x128xbf16, #tpu.memory_space<vmem>>, vector<16x128xbf16>
    tpu.vector_store %arg8[%c0_17, %c0_18], %22 {strides = array<i32>} : memref<16x128xbf16, #tpu.memory_space<vmem>>, vector<16x128xbf16>,
    return
  }
  func.func @transform_0(%arg0: i32) -> (i32, i32) {
    %c0_i32 = arith.constant 0 : i32
    %c0_i32_0 = arith.constant 0 : i32
    return %arg0, %c0_i32 : i32, i32
  }
  func.func @transform_1(%arg0: i32) -> (i32, i32) {
    %c0_i32 = arith.constant 0 : i32
    %c0_i32_0 = arith.constant 0 : i32
    %c0_i32_1 = arith.constant 0 : i32
    return %c0_i32, %c0_i32_0 : i32, i32
  }
  func.func @transform_2(%arg0: i32) -> (i32, i32) {
    %c0_i32 = arith.constant 0 : i32
    %c0_i32_0 = arith.constant 0 : i32
    %c0_i32_1 = arith.constant 0 : i32
    return %c0_i32, %c0_i32_0 : i32, i32
  }
  func.func @transform_3(%arg0: i32) -> (i32, i32) {
    %c0_i32 = arith.constant 0 : i32
    %c0_i32_0 = arith.constant 0 : i32
    %c0_i32_1 = arith.constant 0 : i32
    return %c0_i32, %c0_i32_0 : i32, i32
  }
  func.func @transform_4(%arg0: i32) -> (i32, i32) {
    %c0_i32 = arith.constant 0 : i32
    %c0_i32_0 = arith.constant 0 : i32
    %c0_i32_1 = arith.constant 0 : i32
    return %c0_i32, %c0_i32_0 : i32, i32
  }
  func.func @transform_5(%arg0: i32) -> (i32, i32) {
    %c0_i32 = arith.constant 0 : i32
    %c0_i32_0 = arith.constant 0 : i32
    %c0_i32_1 = arith.constant 0 : i32
    return %c0_i32, %c0_i32_0 : i32, i32
  }
  func.func @transform_6(%arg0: i32) -> (i32, i32) {
    %c0_i32 = arith.constant 0 : i32
    %c0_i32_0 = arith.constant 0 : i32
    %c0_i32_1 = arith.constant 0 : i32
    return %c0_i32, %c0_i32_0 : i32, i32
  }
  func.func @transform_7(%arg0: i32) -> (i32, i32) {
    %c0_i32 = arith.constant 0 : i32
    %c0_i32_0 = arith.constant 0 : i32
    return %arg0, %c0_i32 : i32, i32
  }
}

</mosaic_0001>

<bundles_post_ra>
// kernel: mlp_pallas.1
= control target key start
LH: loop header
LB: loop body
LE: loop exit
PB: predicated region body
PF: predicated region fallthrough
CT: control target
= control target key end

     0   :  { %12 = vsyncpa [#allocation3], 0  ;;  %s804_s0 = inlined_call_operand.vmem [shape: bf16[16,128], index: 0, kind: input, shape index: {}]   ;;  %s805_s1 = inlined_call_operand.hbm [shape: bf16[128,128], index: 1, kind: input, shape index: {}]   ;;  %s806_s2 = inlined_call_operand.vmem [shape: f32[1,128], index: 2, kind: input, shape index: {}]   ;;  %s807_s3 = inlined_call_operand.hbm [shape: bf16[128,128], index: 3, kind: input, shape index: {}]   ;;  %s808_s4 = inlined_call_operand.vmem [shape: f32[1,128], index: 4, kind: input, shape index: {}]   ;;  %s809_s5 = inlined_call_operand.hbm [shape: bf16[128,128], index: 5, kind: input, shape index: {}]   ;;  %s810_s6 = inlined_call_operand.vmem [shape: f32[1,128], index: 6, kind: input, shape index: {}]   ;;  %s811_s7 = inlined_call_operand.vmem [shape: bf16[16,128], index: 7, kind: output, shape index: {}]  }
   0x1   :  { %13 = vsyncpa [#allocation5], 0  ;;  %s660_s24 = smov [#allocation4]   ;;  %s661_s26 = smov [#allocation2]  }
   0x2   :  { %s35_s25 = sshll.u32 %s660_s24, 4  ;;  %s21_s27 = sshll.u32 %s661_s26, 4  ;;  %s36_s25 = int_to_ptr.vmem [resolvable:$true] %s35_s25  ;;  %s707_s27 = int_to_ptr.vmem [resolvable:$true] %s21_s27 }
   0x3   :  { %s590_s30 = scalar_lea.hbm %s807_s3, 1024 }
   0x4   :  { %p591_p0 = scmp.ne.s32.totalorder %s807_s3, %s590_s30  ;;  %p594_p1 = scmp.lt.u32.totalorder %s590_s30, %s807_s3 }
   0x6   :  { %p596_p2 = pnand %p594_p1, %p591_p0 }
   0x8   :  { %599 = shalt.err (!%p596_p2)
}
   0x9   :  { %s600_s12 = scalar_lea.vmem %s36_s25, 1024  ;;  %p605_p4 = scmp.lt.s32.totalorder %s36_s25, %s36_s25 }
   0xa   :  { %p601_p3 = scmp.ne.s32.totalorder %s36_s25, %s600_s12  ;;  %p606_p5 = scmp.lt.s32.totalorder %s600_s12, %s600_s12 }
   0xc   :  { %p607_p6 = por %p606_p5, %p605_p4 }
   0xe   :  { %p608_p7 = pnand %p607_p6, %p601_p3 }
  0x10   :  { %611 = shalt.err (!%p608_p7)
}
  0x11   :  { %s662_s13 = smov 64   ;;  %s663_s14 = smov 4  }
  0x12   :  { %41 = dma.hbm_to_vmem [thread:$0]  %s807_s3, 1024, %s36_s25, [#allocation5], %s662_s13, %s662_s13, %s663_s14  }
  0x13   :  { %s612_s19 = scalar_lea.hbm %s805_s1, 1024 }
  0x14   :  { %p613_p8 = scmp.ne.s32.totalorder %s805_s1, %s612_s19  ;;  %p616_p9 = scmp.lt.u32.totalorder %s612_s19, %s805_s1 }
  0x16   :  { %p618_p10 = pnand %p616_p9, %p613_p8 }
  0x18   :  { %621 = shalt.err (!%p618_p10)
}
  0x19   :  { %s622_s24 = scalar_lea.vmem %s707_s27, 1024  ;;  %p627_p12 = scmp.lt.s32.totalorder %s707_s27, %s707_s27 }
  0x1a   :  { %p623_p11 = scmp.ne.s32.totalorder %s707_s27, %s622_s24  ;;  %p628_p13 = scmp.lt.s32.totalorder %s622_s24, %s622_s24 }
  0x1c   :  { %p629_p0 = por %p628_p13, %p627_p12 }
  0x1e   :  { %p630_p1 = pnand %p629_p0, %p623_p11 }
  0x20   :  { %633 = shalt.err (!%p630_p1)
}
  0x21   :  { %27 = dma.hbm_to_vmem [thread:$0]  %s805_s1, 1024, %s707_s27, [#allocation3], %s662_s13, %s662_s13, %s663_s14  }
  0x22   :  { %s664_s26 = smov [#allocation6]   ;;  %s634_s8 = scalar_lea.hbm %s809_s5, 1024 }
  0x23   :  { %s49_s28 = sshll.u32 %s664_s26, 4  ;;  %p635_p2 = scmp.ne.s32.totalorder %s809_s5, %s634_s8  ;;  %s50_s28 = int_to_ptr.vmem [resolvable:$true] %s49_s28 }
  0x24   :  { %p638_p3 = scmp.lt.u32.totalorder %s634_s8, %s809_s5 }
  0x26   :  { %p640_p4 = pnand %p638_p3, %p635_p2 }
  0x28   :  { %643 = shalt.err (!%p640_p4)
}
  0x29   :  { %s644_s15 = scalar_lea.vmem %s50_s28, 1024  ;;  %p649_p6 = scmp.lt.s32.totalorder %s50_s28, %s50_s28 }
  0x2a   :  { %p645_p5 = scmp.ne.s32.totalorder %s50_s28, %s644_s15  ;;  %p650_p7 = scmp.lt.s32.totalorder %s644_s15, %s644_s15 }
  0x2c   :  { %p651_p8 = por %p650_p7, %p649_p6 }
  0x2e   :  { %p652_p9 = pnand %p651_p8, %p645_p5 }
  0x30   :  { %655 = shalt.err (!%p652_p9)
}
  0x31   :  { %55 = dma.hbm_to_vmem [thread:$0]  %s809_s5, 1024, %s50_s28, [#allocation5], %s662_s13, %s662_s13, %s663_s14  }
  0x32   :  { %656 = dma.done.wait [#allocation3], 1024  }
  0x33   :  { %657 = vsyncadd [#allocation3], 4294966272 }
  0x34   :  { %658 = dma.done.wait [#allocation5], 2048  }
  0x35   :  { %659 = vsyncadd [#allocation5], 4294965248  ;;  %v665_v0 = vmov 0.0   ;;  %vm666_vm0 = vmmov 0   ;;  %v565_v1 = vld [vmem:[#allocation2] sm:$0xff]   ;;  %v566_v2 = vld [vmem:[#allocation2 + $0x8] sm:$0xff]  }
  0x36   :  { %498 = vmatprep.subr.bf16.mxu0 %v665_v0  ;;  %514 = vmatprep.mubr.msk.bf16.mxu0 %vm666_vm0, %v665_v0  ;;  %v567_v3 = vld [vmem:[#allocation2 + $0x10] sm:$0xff]   ;;  %v574_v4 = vld [vmem:[#allocation4] sm:$0xff]   ;;  %v568_v5 = vld [vmem:[#allocation2 + $0x18] sm:$0xff]  }
  0x37   :  { %518 = vmatprep.subr.bf16.mxu1 %v665_v0  ;;  %534 = vmatprep.mubr.msk.bf16.mxu1 %vm666_vm0, %v665_v0  ;;  %v575_v6 = vld [vmem:[#allocation4 + $0x8] sm:$0xff]   ;;  %v569_v7 = vld [vmem:[#allocation2 + $0x20] sm:$0xff]   ;;  %v576_v8 = vld [vmem:[#allocation4 + $0x10] sm:$0xff]  }
  0x38   :  { %499 = vmatpush3.bf16.msra.mxu0 %v565_v1  ;;  %519 = vmatpush3.bf16.msra.mxu1 %v574_v4  ;;  %v570_v9 = vld [vmem:[#allocation2 + $0x28] sm:$0xff]   ;;  %v577_v10 = vld [vmem:[#allocation4 + $0x18] sm:$0xff]   ;;  %v571_v11 = vld [vmem:[#allocation2 + $0x30] sm:$0xff]  }
  0x39   :  { %500 = vmatprep.subr.bf16.mxu0 %v665_v0  ;;  %520 = vmatprep.subr.bf16.mxu1 %v665_v0  ;;  %v578_v12 = vld [vmem:[#allocation4 + $0x20] sm:$0xff]   ;;  %v572_v13 = vld [vmem:[#allocation2 + $0x38] sm:$0xff]   ;;  %v579_v14 = vld [vmem:[#allocation4 + $0x28] sm:$0xff]  }
  0x3a   :  { %v573_v15 = vld [vmem:[%s804_s0] sm:$0xff]   ;;  %v580_v16 = vld [vmem:[#allocation4 + $0x30] sm:$0xff]   ;;  %v581_v17 = vld [vmem:[#allocation4 + $0x38] sm:$0xff]  }
  0x3b   :  { %v582_v18 = vld [vmem:[#allocation6] sm:$0xff]   ;;  %v583_v19 = vld [vmem:[#allocation6 + $0x8] sm:$0xff]   ;;  %v584_v20 = vld [vmem:[#allocation6 + $0x10] sm:$0xff]  }
  0x3c   :  { %501 = vmatpush3.bf16.msra.mxu0 %v566_v2  ;;  %521 = vmatpush3.bf16.msra.mxu1 %v575_v6  ;;  %v585_v21 = vld [vmem:[#allocation6 + $0x18] sm:$0xff]   ;;  %v586_v22 = vld [vmem:[#allocation6 + $0x20] sm:$0xff]   ;;  %v587_v23 = vld [vmem:[#allocation6 + $0x28] sm:$0xff]  }
  0x3d   :  { %502 = vmatprep.subr.bf16.mxu0 %v665_v0  ;;  %522 = vmatprep.subr.bf16.mxu1 %v665_v0  ;;  %v434_v24 = vld [vmem:[%s806_s2] ss:$0 sm:$0xff]  ;;  %v588_v34 = vld [vmem:[#allocation6 + $0x30] sm:$0xff]   ;;  %v589_v35 = vld [vmem:[#allocation6 + $0x38] sm:$0xff]  }
  0x3e   :  { %v444_v36 = vld [vmem:[%s808_s4] ss:$0 sm:$0xff] }
  0x3f   :  { %v453_v46 = vld [vmem:[%s810_s6] ss:$0 sm:$0xff] }
  0x40   :  { %503 = vmatpush3.bf16.msra.mxu0 %v567_v3  ;;  %523 = vmatpush3.bf16.msra.mxu1 %v576_v8 }
  0x41   :  { %504 = vmatprep.subr.bf16.mxu0 %v665_v0  ;;  %524 = vmatprep.subr.bf16.mxu1 %v665_v0 }
  0x44   :  { %505 = vmatpush3.bf16.msra.mxu0 %v568_v5  ;;  %525 = vmatpush3.bf16.msra.mxu1 %v577_v10 }
  0x45   :  { %506 = vmatprep.subr.bf16.mxu0 %v665_v0  ;;  %526 = vmatprep.subr.bf16.mxu1 %v665_v0 }
  0x48   :  { %507 = vmatpush3.bf16.msra.mxu0 %v569_v7  ;;  %527 = vmatpush3.bf16.msra.mxu1 %v578_v12 }
  0x49   :  { %508 = vmatprep.subr.bf16.mxu0 %v665_v0  ;;  %528 = vmatprep.subr.bf16.mxu1 %v665_v0 }
  0x4c   :  { %509 = vmatpush3.bf16.msra.mxu0 %v570_v9  ;;  %529 = vmatpush3.bf16.msra.mxu1 %v579_v14 }
  0x4d   :  { %510 = vmatprep.subr.bf16.mxu0 %v665_v0  ;;  %530 = vmatprep.subr.bf16.mxu1 %v665_v0 }
  0x50   :  { %511 = vmatpush3.bf16.msra.mxu0 %v571_v11  ;;  %531 = vmatpush3.bf16.msra.mxu1 %v580_v16 }
  0x51   :  { %512 = vmatprep.subr.bf16.mxu0 %v665_v0  ;;  %532 = vmatprep.subr.bf16.mxu1 %v665_v0 }
  0x54   :  { %513 = vmatpush3.bf16.msra.mxu0 %v572_v13  ;;  %533 = vmatpush3.bf16.msra.mxu1 %v581_v17 }
  0x55   :  { %538 = vmatprep.subr.bf16.mxu0 %v665_v0 }
  0x57   :  { %515 = vmatmul.mubr.bf16.vlgmr.msra.gmra.mrb[0].mxu0 %v573_v15 }
  0x58   :  { %554 = vmatprep.mubr.msk.bf16.mxu0 %vm666_vm0, %v665_v0  ;;  %539 = vmatpush3.bf16.msra.mxu0 %v582_v18 }
  0x59   :  { %540 = vmatprep.subr.bf16.mxu0 %v665_v0 }
  0x5c   :  { %541 = vmatpush3.bf16.msra.mxu0 %v583_v19 }
  0x5d   :  { %542 = vmatprep.subr.bf16.mxu0 %v665_v0 }
  0x60   :  { %543 = vmatpush3.bf16.msra.mxu0 %v584_v20 }
  0x61   :  { %544 = vmatprep.subr.bf16.mxu0 %v665_v0 }
  0x64   :  { %545 = vmatpush3.bf16.msra.mxu0 %v585_v21 }
  0x65   :  { %546 = vmatprep.subr.bf16.mxu0 %v665_v0 }
  0x68   :  { %547 = vmatpush3.bf16.msra.mxu0 %v586_v22 }
  0x69   :  { %548 = vmatprep.subr.bf16.mxu0 %v665_v0 }
  0x6c   :  { %549 = vmatpush3.bf16.msra.mxu0 %v587_v23 }
  0x6d   :  { %550 = vmatprep.subr.bf16.mxu0 %v665_v0 }
  0x70   :  { %551 = vmatpush3.bf16.msra.mxu0 %v588_v34 }
  0x71   :  { %552 = vmatprep.subr.bf16.mxu0 %v665_v0 }
  0x74   :  { %553 = vmatpush3.bf16.msra.mxu0 %v589_v35 }
 0x12a   :  { %v181_v25 = vpop.f32.mrb[0].mxu0 }
 0x12b   :  { %v182_v26 = vadd.f32 %v434_v24, %v181_v25  ;;  %v516_v27 = vpop.f32.mrb[1].mxu0 }
 0x12c   :  { %v184_v28 = vpop.f32.mrb[2].mxu0 }
 0x12d   :  { %v185_v29 = vadd.f32 %v434_v24, %v184_v28  ;;  %v517_v30 = vpop.f32.mrb[3].mxu0  ;;  %v188_v31 = vmax.f32 %v182_v26, 0.0 }
 0x12f   :  { %v189_v32 = vmax.f32 %v185_v29, 0.0 }
 0x131   :  { %v190_v33 = vpack.c.bf16 %v189_v32, %v188_v31 }
 0x133   :  { %535 = vmatmul.mubr.bf16.vlgmr.msra.gmra.mrb[0].mxu1 %v190_v33 }
 0x206   :  { %v296_v37 = vpop.f32.mrb[0].mxu1 }
 0x207   :  { %v297_v38 = vadd.f32 %v444_v36, %v296_v37  ;;  %v536_v39 = vpop.f32.mrb[1].mxu1 }
 0x208   :  { %v299_v40 = vpop.f32.mrb[2].mxu1 }
 0x209   :  { %v300_v41 = vadd.f32 %v444_v36, %v299_v40  ;;  %v537_v42 = vpop.f32.mrb[3].mxu1  ;;  %v303_v43 = vmax.f32 %v297_v38, 0.0 }
 0x20b   :  { %v304_v44 = vmax.f32 %v300_v41, 0.0 }
 0x20d   :  { %v305_v45 = vpack.c.bf16 %v304_v44, %v303_v43 }
 0x20f   :  { %555 = vmatmul.mubr.bf16.vlgmr.msra.gmra.mrb[4].mxu0 %v305_v45 }
 0x2e2   :  { %v411_v47 = vpop.f32.mrb[4].mxu0 }
 0x2e3   :  { %v556_v48 = vpop.f32.mrb[5].mxu0  ;;  %v412_v50 = vadd.f32 %v453_v46, %v411_v47 }
 0x2e4   :  { %v414_v49 = vpop.f32.mrb[6].mxu0 }
 0x2e5   :  { %v415_v51 = vadd.f32 %v453_v46, %v414_v49  ;;  %v557_v52 = vpop.f32.mrb[7].mxu0 }
 0x2e7   :  { %v469_v53 = vpack.c.bf16 %v415_v51, %v412_v50 }
 0x2e9   :  { %470 = vst [vmem:[%s811_s7] sm:$0xff] %v469_v53  }
 0x2ea   :  { %432 = vsyncpa [#allocation3], 1 }
 0x2eb   :  { %433 = vsyncpa [#allocation5], 1 }

</bundles_post_ra>
